<compile_context>
chip_gen: v6e
topology: v6e:2x2x1
jax: 0.10.0
libtpu: 0.0.40
codegen_flags: <defaults>
</compile_context>

<pallas_src>
import math

import numpy as np
import jax
import jax.numpy as jnp
from jax.experimental import pallas as pl
from jax.experimental.pallas import tpu as pltpu

# ----- problem sizes (small, consistent with the module) -----
B = 2          # batch
S = 16         # max_session_len
E = 32         # embedding_size
L = 5          # number of mixing levels
H = 4          # number of heads
VOCAB = 50     # item vocabulary size

BL = B * L
BS = B * S
VOCAB_PAD = 64     # table sublane padding (>= VOCAB, multiple of 8)
E_PAD = 128        # table / output lane padding (lane-dense stores & matmuls)
OUT_R = 8          # padded output rows (>= B, one sublane tile)


def attention_mixer_kernel(lens_ref, seq_ref, tab_ref, wlin_ref, wq_ref, wk_ref,
                           lvl_ref, colinfo_ref, negmask_ref, hsum_ref,
                           redmat_ref, o_ref):
    # lens_ref   : (B,)              int32  SMEM  session lengths
    # seq_ref    : (BS, 1)           int32  VMEM  flattened item ids
    # tab_ref    : (VOCAB_PAD,E_PAD) f32    VMEM  zero-padded embedding table
    # wlin_ref   : (E, L*E)          bf16         stacked per-level linear (pre-T)
    # wq_ref     : (E, H*E)          bf16         head-stacked WQ (pre-T, /sqrt(E) folded)
    # wk_ref     : (E, H*E)          bf16         head-stacked WK (pre-T)
    # lvl_ref    : (BL, 1)           int32        level index per flat (batch,level) row
    # colinfo_ref: (2, BS)           int32        row0 = position-in-session, row1 = batch id
    # negmask_ref: (BL, BS)          f32          0 same-batch / -1e30 cross-batch
    # hsum_ref   : (H*BS, H*BS)      f32          0/1 per-head block-sum matrix
    # redmat_ref : (OUT_R, BL)       f32          0/1 per-batch level-sum matrix
    # o_ref      : (OUT_R, E_PAD)    f32          padded output
    f32 = jnp.float32
    bf16 = jnp.bfloat16

    # ---- embedding gather: exact one-hot matmul on the MXU ----
    vocab_ids = jax.lax.broadcasted_iota(jnp.int32, (BS, VOCAB_PAD), 1)
    onehot = (seq_ref[...] == vocab_ids).astype(f32)                      # (BS, VOCAB_PAD)
    emb = jnp.dot(onehot, tab_ref[...], preferred_element_type=f32)       # (BS, E_PAD) f32
    emb_e = emb[:, :E]                                                    # (BS, E)
    emb_bf = emb_e.astype(bf16)

    # ---- runtime cumulative level masks, block-diagonal over the batch ----
    col_s = colinfo_ref[0:1, :]                                           # (1, BS)
    col_b = colinfo_ref[1:2, :]                                           # (1, BS)
    last = jnp.zeros((1, BS), jnp.int32)
    for b in range(B):                                                    # B scalar SMEM reads
        last = jnp.where(col_b == b, lens_ref[b], last)
    last = last - 1                                                       # session last index
    lvl = lvl_ref[...]                                                    # (BL, 1)
    lo = jnp.maximum(last - lvl, 0)                                       # (BL, BS)
    hi = jnp.maximum(last, 0)                                             # (1, BS)
    neg = negmask_ref[...]                                                # (BL, BS)
    same_b = neg > -1.0
    bigmask = (same_b & (col_s >= lo) & (col_s <= hi)).astype(f32)        # (BL, BS)

    # attention_query_embeddings, flattened over (batch, level); exact f32 sums
    aq = jnp.dot(bigmask, emb_e, preferred_element_type=f32)              # (BL, E)

    # per-level Linear: one matmul, then collapse the block diagonal with
    # L static 32-lane slices + selects (no 160-lane dsel multiply)
    qbig = jnp.dot(aq.astype(bf16), wlin_ref[...],
                   preferred_element_type=f32)                            # (BL, L*E)
    qlin = jnp.where(lvl == 0, qbig[:, 0:E], 0.0)
    for l in range(1, L):
        qlin = qlin + jnp.where(lvl == l, qbig[:, l * E:(l + 1) * E], 0.0)

    # head-stacked projections (1/sqrt(E) already folded into wq)
    q_all = jnp.dot(qlin.astype(bf16), wq_ref[...],
                    preferred_element_type=f32)                           # (BL, H*E)
    k_all = jnp.dot(emb_bf, wk_ref[...], preferred_element_type=f32)      # (BS, H*E)
    q_bf = q_all.astype(bf16)
    k_bf = k_all.astype(bf16)

    # ---- head-stacked scores: (BL, H*BS) lane-dense buffer ----
    shifted = []
    for h in range(H):                                                    # H = 4, unrolled
        s_h = jax.lax.dot_general(
            q_bf[:, h * E:(h + 1) * E], k_bf[:, h * E:(h + 1) * E],
            (((1,), (1,)), ((), ())),
            preferred_element_type=f32) + neg                             # mask cross-batch
        m_h = jnp.max(s_h, axis=-1, keepdims=True)                        # per-head stability
        shifted.append(s_h - m_h)
    scores = jnp.concatenate(shifted, axis=-1)                            # (BL, H*BS) f32

    # ---- lane-dense softmax / p=4 pooling over the 128-lane buffer ----
    p = jnp.exp(scores)                                                   # one EUP pass
    denom = jnp.dot(p, hsum_ref[...], preferred_element_type=f32)         # per-head sums, bcast
    attn = p * pl.reciprocal(denom, approx=True)
    a2 = attn * attn
    a4 = a2 * a2
    pooled4 = jnp.dot(redmat_ref[...], a4, preferred_element_type=f32)    # (OUT_R, H*BS)
    pooled = jnp.sqrt(jnp.sqrt(pooled4))
    pooled_mean = (pooled[:, 0:BS] + pooled[:, BS:2 * BS]
                   + pooled[:, 2 * BS:3 * BS]
                   + pooled[:, 3 * BS:4 * BS]) * (1.0 / H)                # (OUT_R, BS)

    # final pooling against the (f32) embeddings; cross-batch columns are 0
    o_ref[...] = jnp.dot(pooled_mean, emb, preferred_element_type=f32)    # (OUT_R, E_PAD)


def init_params(emb_table, w_lin, w_q, w_k):
    """ONE-TIME init: weight restacking / padding / scale folding + baked mask constants."""
    emb_np = np.asarray(emb_table, dtype=np.float32)
    lin_np = np.asarray(w_lin, dtype=np.float32)       # (L, E, E)  y = x @ W.T
    q_np = np.asarray(w_q, dtype=np.float32)           # (H, E, E)
    k_np = np.asarray(w_k, dtype=np.float32)           # (H, E, E)

    tab = np.zeros((VOCAB_PAD, E_PAD), np.float32)
    tab[:VOCAB, :E] = emb_np

    # nn.Linear computes y = x @ W.T; pre-transpose / stack so the kernel uses x @ W.
    wlin = np.transpose(lin_np, (2, 0, 1)).reshape(E, L * E)                 # [f, l*E+g] = W_lin[l][g,f]
    wq = np.transpose(q_np, (2, 0, 1)).reshape(E, H * E) * (1.0 / math.sqrt(E))  # scale folded
    wk = np.transpose(k_np, (2, 0, 1)).reshape(E, H * E)

    rows = np.arange(BL, dtype=np.int32)
    cols = np.arange(BS, dtype=np.int32)
    lvl = (rows % L).reshape(BL, 1).astype(np.int32)
    colinfo = np.stack([cols % S, cols // S], axis=0).astype(np.int32)       # (2, BS)
    negmask = np.where((rows // L).reshape(BL, 1) == (cols // S).reshape(1, BS),
                       0.0, -1e30).astype(np.float32)                        # (BL, BS)
    hsum = np.kron(np.eye(H, dtype=np.float32),
                   np.ones((BS, BS), np.float32))                            # (H*BS, H*BS)
    redmat = np.zeros((OUT_R, BL), np.float32)
    for b in range(B):
        redmat[b, b * L:(b + 1) * L] = 1.0

    return {
        "tab": jnp.asarray(tab),
        "wlin": jnp.asarray(wlin, jnp.bfloat16),
        "wq": jnp.asarray(wq, jnp.bfloat16),
        "wk": jnp.asarray(wk, jnp.bfloat16),
        "lvl": jnp.asarray(lvl),
        "colinfo": jnp.asarray(colinfo),
        "negmask": jnp.asarray(negmask),
        "hsum": jnp.asarray(hsum),
        "redmat": jnp.asarray(redmat),
    }


@jax.jit
def attention_mixer_forward(item_seq, item_seq_len, params):
    """Hot path: minimal glue + one fused Pallas call (no grid; everything VMEM-resident)."""
    seq2d = item_seq.reshape(B * S, 1).astype(jnp.int32)
    lens = item_seq_len.astype(jnp.int32)

    vmem = pl.BlockSpec(memory_space=pltpu.MemorySpace.VMEM)
    smem = pl.BlockSpec(memory_space=pltpu.MemorySpace.SMEM)

    # TODO(synk): if batch grows, add a grid over batch with
    # dimension_semantics=("parallel",) so both v7x TensorCores are used.
    out_pad = pl.pallas_call(
        attention_mixer_kernel,
        out_shape=jax.ShapeDtypeStruct((OUT_R, E_PAD), jnp.float32),
        in_specs=[smem] + [vmem] * 10,
        out_specs=vmem,
    )(lens, seq2d, params["tab"], params["wlin"], params["wq"], params["wk"],
      params["lvl"], params["colinfo"], params["negmask"], params["hsum"],
      params["redmat"])
    return out_pad[:B, :E]


def reference_forward(item_seq, item_seq_len, emb_table, w_lin, w_q, w_k):
    """Pure-JAX float32 reference mirroring the PyTorch forward exactly."""
    item_emb = emb_table[item_seq].astype(jnp.float32)
    pos = jnp.maximum(item_seq_len[:, None] - 1 - jnp.arange(L)[None, :], 0)
    onehots = jax.nn.one_hot(pos, S, dtype=jnp.float32)
    masks = (jnp.cumsum(onehots, axis=1) > 0).astype(jnp.float32)

    aq = jnp.einsum('bls,bse->ble', masks, item_emb)
    qlin = jnp.einsum('ble,lfe->blf', aq, w_lin)
    q = jnp.einsum('blf,hgf->bhlg', qlin, w_q)
    k = jnp.einsum('bse,hfe->bhsf', item_emb, w_k)
    scores = jnp.einsum('bhlg,bhsg->bhls', q, k) / math.sqrt(E)
    attn = jax.nn.softmax(scores, axis=-1)
    pooled = jnp.power(jnp.sum(attn ** 4, axis=2), 0.25)         # (B, H, S)
    pooled = jnp.mean(pooled, axis=1)                            # (B, S)
    return jnp.einsum('bs,bse->be', pooled, item_emb)


if __name__ == "__main__":
    key = jax.random.PRNGKey(0)
    k_emb, k_lin, k_q, k_k, k_seq, k_len = jax.random.split(key, 6)

    # deterministic synthetic parameters
    emb_table = jax.random.normal(k_emb, (VOCAB, E), jnp.float32) * 0.1
    w_lin = jax.random.normal(k_lin, (L, E, E), jnp.float32) * (1.0 / math.sqrt(E))
    w_q = jax.random.normal(k_q, (H, E, E), jnp.float32) * (1.0 / math.sqrt(E))
    w_k = jax.random.normal(k_k, (H, E, E), jnp.float32) * (1.0 / math.sqrt(E))

    # deterministic inputs
    item_seq = jax.random.randint(k_seq, (B, S), 0, VOCAB, jnp.int32)
    item_seq_len = jax.random.randint(k_len, (B,), 1, S + 1, jnp.int32)

    # one-time init (weight restacking / constant baking), then the fused kernel
    params = init_params(emb_table, w_lin, w_q, w_k)
    out = attention_mixer_forward(item_seq, item_seq_len, params)
    out = jax.block_until_ready(out)

    ref = reference_forward(item_seq, item_seq_len, emb_table, w_lin, w_q, w_k)
    assert out.shape == (B, E)
    # kernel uses bf16 MXU operands (f32 accumulation) -> compare loosely vs f32 ref
    assert jnp.allclose(out, ref, atol=1e-2, rtol=2e-2), "kernel/reference mismatch"

    print("KERNEL_OK")
</pallas_src>

<mosaic_0001>
module attributes {stable_mosaic.version = 11 : i64} {
  func.func @attention_mixer_kernel(%arg0: memref<2xi32, #tpu.memory_space<smem>>, %arg1: memref<32x1xi32, #tpu.memory_space<vmem>>, %arg2: memref<64x128xf32, #tpu.memory_space<vmem>>, %arg3: memref<32x160xbf16, #tpu.memory_space<vmem>>, %arg4: memref<32x128xbf16, #tpu.memory_space<vmem>>, %arg5: memref<32x128xbf16, #tpu.memory_space<vmem>>, %arg6: memref<10x1xi32, #tpu.memory_space<vmem>>, %arg7: memref<2x32xi32, #tpu.memory_space<vmem>>, %arg8: memref<10x32xf32, #tpu.memory_space<vmem>>, %arg9: memref<128x128xf32, #tpu.memory_space<vmem>>, %arg10: memref<8x10xf32, #tpu.memory_space<vmem>>, %arg11: memref<8x128xf32, #tpu.memory_space<vmem>>) attributes {dimension_semantics = [], scalar_prefetch = 0 : i64, scratch_operands = 0 : i64, tpu.core_type = #tpu.core_type<tc>} {
    %0 = tpu.iota {dimensions = array<i32: 1>} : vector<32x64xi32>
    %c0 = arith.constant 0 : index
    %c0_0 = arith.constant 0 : index
    %1 = vector.load %arg1[%c0, %c0_0] : memref<32x1xi32, #tpu.memory_space<vmem>>, vector<32x1xi32>
    %2 = vector.broadcast %1 : vector<32x1xi32> to vector<32x64xi32>
    %3 = arith.cmpi eq, %2, %0 : vector<32x64xi32>
    %4 = arith.extui %3 : vector<32x64xi1> to vector<32x64xi32>
    %5 = arith.sitofp %4 : vector<32x64xi32> to vector<32x64xf32>
    %c0_1 = arith.constant 0 : index
    %c0_2 = arith.constant 0 : index
    %6 = vector.load %arg2[%c0_1, %c0_2] : memref<64x128xf32, #tpu.memory_space<vmem>>, vector<64x128xf32>
    %cst = arith.constant dense<0.000000e+00> : vector<32x128xf32>
    %7 = tpu.matmul %5, %6, %cst {dimension_numbers = #tpu.dot_dimension_numbers<[1], [0], [0], [1], [0, 0, 1, 1], [], []>} : vector<32x64xf32>, vector<64x128xf32>, vector<32x128xf32> -> vector<32x128xf32>
    %8 = vector.extract_strided_slice %7 {offsets = [0, 0], sizes = [32, 32], strides = [1, 1]} : vector<32x128xf32> to vector<32x32xf32>
    %9 = arith.truncf %8 : vector<32x32xf32> to vector<32x32xbf16>
    %c0_3 = arith.constant 0 : index
    %c0_4 = arith.constant 0 : index
    %10 = vector.load %arg7[%c0_3, %c0_4] : memref<2x32xi32, #tpu.memory_space<vmem>>, vector<1x32xi32>
    %c1 = arith.constant 1 : index
    %c0_5 = arith.constant 0 : index
    %11 = vector.load %arg7[%c1, %c0_5] : memref<2x32xi32, #tpu.memory_space<vmem>>, vector<1x32xi32>
    %c0_i32 = arith.constant 0 : i32
    %12 = vector.broadcast %c0_i32 : i32 to vector<1x32xi32>
    %c0_i32_6 = arith.constant 0 : i32
    %13 = vector.broadcast %c0_i32_6 : i32 to vector<1x32xi32>
    %14 = arith.cmpi eq, %11, %13 : vector<1x32xi32>
    %c0_7 = arith.constant 0 : index
    %15 = memref.load %arg0[%c0_7] : memref<2xi32, #tpu.memory_space<smem>>
    %16 = vector.broadcast %15 : i32 to vector<1x32xi32>
    %17 = arith.select %14, %16, %12 : vector<1x32xi1>, vector<1x32xi32>
    %c1_i32 = arith.constant 1 : i32
    %18 = vector.broadcast %c1_i32 : i32 to vector<1x32xi32>
    %19 = arith.cmpi eq, %11, %18 : vector<1x32xi32>
    %c1_8 = arith.constant 1 : index
    %20 = memref.load %arg0[%c1_8] : memref<2xi32, #tpu.memory_space<smem>>
    %21 = vector.broadcast %20 : i32 to vector<1x32xi32>
    %22 = arith.select %19, %21, %17 : vector<1x32xi1>, vector<1x32xi32>
    %c1_i32_9 = arith.constant 1 : i32
    %23 = vector.broadcast %c1_i32_9 : i32 to vector<1x32xi32>
    %24 = arith.subi %22, %23 : vector<1x32xi32>
    %c0_10 = arith.constant 0 : index
    %c0_11 = arith.constant 0 : index
    %25 = vector.load %arg6[%c0_10, %c0_11] : memref<10x1xi32, #tpu.memory_space<vmem>>, vector<10x1xi32>
    %26 = vector.broadcast %24 : vector<1x32xi32> to vector<10x32xi32>
    %27 = vector.broadcast %25 : vector<10x1xi32> to vector<10x32xi32>
    %28 = arith.subi %26, %27 : vector<10x32xi32>
    %c0_i32_12 = arith.constant 0 : i32
    %29 = vector.broadcast %c0_i32_12 : i32 to vector<10x32xi32>
    %30 = arith.maxsi %28, %29 : vector<10x32xi32>
    %c0_i32_13 = arith.constant 0 : i32
    %31 = vector.broadcast %c0_i32_13 : i32 to vector<1x32xi32>
    %32 = arith.maxsi %24, %31 : vector<1x32xi32>
    %c0_14 = arith.constant 0 : index
    %c0_15 = arith.constant 0 : index
    %33 = vector.load %arg8[%c0_14, %c0_15] : memref<10x32xf32, #tpu.memory_space<vmem>>, vector<10x32xf32>
    %cst_16 = arith.constant -1.000000e+00 : f32
    %34 = vector.broadcast %cst_16 : f32 to vector<10x32xf32>
    %35 = arith.cmpf ogt, %33, %34 : vector<10x32xf32>
    %36 = vector.broadcast %10 : vector<1x32xi32> to vector<10x32xi32>
    %37 = arith.cmpi sge, %36, %30 : vector<10x32xi32>
    %38 = arith.andi %35, %37 : vector<10x32xi1>
    %39 = arith.cmpi sle, %10, %32 : vector<1x32xi32>
    %40 = vector.broadcast %39 : vector<1x32xi1> to vector<10x32xi1>
    %41 = arith.andi %38, %40 : vector<10x32xi1>
    %42 = arith.extui %41 : vector<10x32xi1> to vector<10x32xi32>
    %43 = arith.sitofp %42 : vector<10x32xi32> to vector<10x32xf32>
    %cst_17 = arith.constant dense<0.000000e+00> : vector<10x32xf32>
    %44 = tpu.matmul %43, %8, %cst_17 {dimension_numbers = #tpu.dot_dimension_numbers<[1], [0], [0], [1], [0, 0, 1, 1], [], []>} : vector<10x32xf32>, vector<32x32xf32>, vector<10x32xf32> -> vector<10x32xf32>
    %45 = arith.truncf %44 : vector<10x32xf32> to vector<10x32xbf16>
    %c0_18 = arith.constant 0 : index
    %c0_19 = arith.constant 0 : index
    %46 = vector.load %arg3[%c0_18, %c0_19] : memref<32x160xbf16, #tpu.memory_space<vmem>>, vector<32x160xbf16>
    %cst_20 = arith.constant dense<0.000000e+00> : vector<10x160xf32>
    %47 = tpu.matmul %45, %46, %cst_20 {dimension_numbers = #tpu.dot_dimension_numbers<[1], [0], [0], [1], [0, 0, 1, 1], [], []>} : vector<10x32xbf16>, vector<32x160xbf16>, vector<10x160xf32> -> vector<10x160xf32>
    %c0_i32_21 = arith.constant 0 : i32
    %48 = vector.broadcast %c0_i32_21 : i32 to vector<10x1xi32>
    %49 = arith.cmpi eq, %25, %48 : vector<10x1xi32>
    %50 = vector.extract_strided_slice %47 {offsets = [0, 0], sizes = [10, 32], strides = [1, 1]} : vector<10x160xf32> to vector<10x32xf32>
    %cst_22 = arith.constant 0.000000e+00 : f32
    %51 = vector.shape_cast %49 : vector<10x1xi1> to vector<10x1xi1>
    %52 = vector.broadcast %51 : vector<10x1xi1> to vector<10x32xi1>
    %53 = vector.broadcast %cst_22 : f32 to vector<10x32xf32>
    %54 = arith.select %52, %50, %53 : vector<10x32xi1>, vector<10x32xf32>
    %c1_i32_23 = arith.constant 1 : i32
    %55 = vector.broadcast %c1_i32_23 : i32 to vector<10x1xi32>
    %56 = arith.cmpi eq, %25, %55 : vector<10x1xi32>
    %57 = vector.extract_strided_slice %47 {offsets = [0, 32], sizes = [10, 32], strides = [1, 1]} : vector<10x160xf32> to vector<10x32xf32>
    %cst_24 = arith.constant 0.000000e+00 : f32
    %58 = vector.shape_cast %56 : vector<10x1xi1> to vector<10x1xi1>
    %59 = vector.broadcast %58 : vector<10x1xi1> to vector<10x32xi1>
    %60 = vector.broadcast %cst_24 : f32 to vector<10x32xf32>
    %61 = arith.select %59, %57, %60 : vector<10x32xi1>, vector<10x32xf32>
    %62 = arith.addf %54, %61 : vector<10x32xf32>
    %c2_i32 = arith.constant 2 : i32
    %63 = vector.broadcast %c2_i32 : i32 to vector<10x1xi32>
    %64 = arith.cmpi eq, %25, %63 : vector<10x1xi32>
    %65 = vector.extract_strided_slice %47 {offsets = [0, 64], sizes = [10, 32], strides = [1, 1]} : vector<10x160xf32> to vector<10x32xf32>
    %cst_25 = arith.constant 0.000000e+00 : f32
    %66 = vector.shape_cast %64 : vector<10x1xi1> to vector<10x1xi1>
    %67 = vector.broadcast %66 : vector<10x1xi1> to vector<10x32xi1>
    %68 = vector.broadcast %cst_25 : f32 to vector<10x32xf32>
    %69 = arith.select %67, %65, %68 : vector<10x32xi1>, vector<10x32xf32>
    %70 = arith.addf %62, %69 : vector<10x32xf32>
    %c3_i32 = arith.constant 3 : i32
    %71 = vector.broadcast %c3_i32 : i32 to vector<10x1xi32>
    %72 = arith.cmpi eq, %25, %71 : vector<10x1xi32>
    %73 = vector.extract_strided_slice %47 {offsets = [0, 96], sizes = [10, 32], strides = [1, 1]} : vector<10x160xf32> to vector<10x32xf32>
    %cst_26 = arith.constant 0.000000e+00 : f32
    %74 = vector.shape_cast %72 : vector<10x1xi1> to vector<10x1xi1>
    %75 = vector.broadcast %74 : vector<10x1xi1> to vector<10x32xi1>
    %76 = vector.broadcast %cst_26 : f32 to vector<10x32xf32>
    %77 = arith.select %75, %73, %76 : vector<10x32xi1>, vector<10x32xf32>
    %78 = arith.addf %70, %77 : vector<10x32xf32>
    %c4_i32 = arith.constant 4 : i32
    %79 = vector.broadcast %c4_i32 : i32 to vector<10x1xi32>
    %80 = arith.cmpi eq, %25, %79 : vector<10x1xi32>
    %81 = vector.extract_strided_slice %47 {offsets = [0, 128], sizes = [10, 32], strides = [1, 1]} : vector<10x160xf32> to vector<10x32xf32>
    %cst_27 = arith.constant 0.000000e+00 : f32
    %82 = vector.shape_cast %80 : vector<10x1xi1> to vector<10x1xi1>
    %83 = vector.broadcast %82 : vector<10x1xi1> to vector<10x32xi1>
    %84 = vector.broadcast %cst_27 : f32 to vector<10x32xf32>
    %85 = arith.select %83, %81, %84 : vector<10x32xi1>, vector<10x32xf32>
    %86 = arith.addf %78, %85 : vector<10x32xf32>
    %87 = arith.truncf %86 : vector<10x32xf32> to vector<10x32xbf16>
    %c0_28 = arith.constant 0 : index
    %c0_29 = arith.constant 0 : index
    %88 = vector.load %arg4[%c0_28, %c0_29] : memref<32x128xbf16, #tpu.memory_space<vmem>>, vector<32x128xbf16>
    %cst_30 = arith.constant dense<0.000000e+00> : vector<10x128xf32>
    %89 = tpu.matmul %87, %88, %cst_30 {dimension_numbers = #tpu.dot_dimension_numbers<[1], [0], [0], [1], [0, 0, 1, 1], [], []>} : vector<10x32xbf16>, vector<32x128xbf16>, vector<10x128xf32> -> vector<10x128xf32>
    %c0_31 = arith.constant 0 : index
    %c0_32 = arith.constant 0 : index
    %90 = vector.load %arg5[%c0_31, %c0_32] : memref<32x128xbf16, #tpu.memory_space<vmem>>, vector<32x128xbf16>
    %cst_33 = arith.constant dense<0.000000e+00> : vector<32x128xf32>
    %91 = tpu.matmul %9, %90, %cst_33 {dimension_numbers = #tpu.dot_dimension_numbers<[1], [0], [0], [1], [0, 0, 1, 1], [], []>} : vector<32x32xbf16>, vector<32x128xbf16>, vector<32x128xf32> -> vector<32x128xf32>
    %92 = arith.truncf %89 : vector<10x128xf32> to vector<10x128xbf16>
    %93 = arith.truncf %91 : vector<32x128xf32> to vector<32x128xbf16>
    %94 = vector.extract_strided_slice %92 {offsets = [0, 0], sizes = [10, 32], strides = [1, 1]} : vector<10x128xbf16> to vector<10x32xbf16>
    %95 = vector.extract_strided_slice %93 {offsets = [0, 0], sizes = [32, 32], strides = [1, 1]} : vector<32x128xbf16> to vector<32x32xbf16>
    %cst_34 = arith.constant dense<0.000000e+00> : vector<10x32xf32>
    %96 = tpu.matmul %94, %95, %cst_34 {dimension_numbers = #tpu.dot_dimension_numbers<[1], [1], [0], [0], [0, 0, 1, 0], [], []>} : vector<10x32xbf16>, vector<32x32xbf16>, vector<10x32xf32> -> vector<10x32xf32>
    %97 = arith.addf %96, %33 : vector<10x32xf32>
    %cst_35 = arith.constant dense<0xFF800000> : vector<10xf32>
    %98 = vector.multi_reduction <maximumf>, %97, %cst_35 [1] : vector<10x32xf32> to vector<10xf32>
    %99 = vector.shape_cast %98 : vector<10xf32> to vector<10x1xf32>
    %100 = vector.broadcast %99 : vector<10x1xf32> to vector<10x32xf32>
    %101 = arith.subf %97, %100 : vector<10x32xf32>
    %102 = vector.extract_strided_slice %92 {offsets = [0, 32], sizes = [10, 32], strides = [1, 1]} : vector<10x128xbf16> to vector<10x32xbf16>
    %103 = vector.extract_strided_slice %93 {offsets = [0, 32], sizes = [32, 32], strides = [1, 1]} : vector<32x128xbf16> to vector<32x32xbf16>
    %cst_36 = arith.constant dense<0.000000e+00> : vector<10x32xf32>
    %104 = tpu.matmul %102, %103, %cst_36 {dimension_numbers = #tpu.dot_dimension_numbers<[1], [1], [0], [0], [0, 0, 1, 0], [], []>} : vector<10x32xbf16>, vector<32x32xbf16>, vector<10x32xf32> -> vector<10x32xf32>
    %105 = arith.addf %104, %33 : vector<10x32xf32>
    %cst_37 = arith.constant dense<0xFF800000> : vector<10xf32>
    %106 = vector.multi_reduction <maximumf>, %105, %cst_37 [1] : vector<10x32xf32> to vector<10xf32>
    %107 = vector.shape_cast %106 : vector<10xf32> to vector<10x1xf32>
    %108 = vector.broadcast %107 : vector<10x1xf32> to vector<10x32xf32>
    %109 = arith.subf %105, %108 : vector<10x32xf32>
    %110 = vector.extract_strided_slice %92 {offsets = [0, 64], sizes = [10, 32], strides = [1, 1]} : vector<10x128xbf16> to vector<10x32xbf16>
    %111 = vector.extract_strided_slice %93 {offsets = [0, 64], sizes = [32, 32], strides = [1, 1]} : vector<32x128xbf16> to vector<32x32xbf16>
    %cst_38 = arith.constant dense<0.000000e+00> : vector<10x32xf32>
    %112 = tpu.matmul %110, %111, %cst_38 {dimension_numbers = #tpu.dot_dimension_numbers<[1], [1], [0], [0], [0, 0, 1, 0], [], []>} : vector<10x32xbf16>, vector<32x32xbf16>, vector<10x32xf32> -> vector<10x32xf32>
    %113 = arith.addf %112, %33 : vector<10x32xf32>
    %cst_39 = arith.constant dense<0xFF800000> : vector<10xf32>
    %114 = vector.multi_reduction <maximumf>, %113, %cst_39 [1] : vector<10x32xf32> to vector<10xf32>
    %115 = vector.shape_cast %114 : vector<10xf32> to vector<10x1xf32>
    %116 = vector.broadcast %115 : vector<10x1xf32> to vector<10x32xf32>
    %117 = arith.subf %113, %116 : vector<10x32xf32>
    %118 = vector.extract_strided_slice %92 {offsets = [0, 96], sizes = [10, 32], strides = [1, 1]} : vector<10x128xbf16> to vector<10x32xbf16>
    %119 = vector.extract_strided_slice %93 {offsets = [0, 96], sizes = [32, 32], strides = [1, 1]} : vector<32x128xbf16> to vector<32x32xbf16>
    %cst_40 = arith.constant dense<0.000000e+00> : vector<10x32xf32>
    %120 = tpu.matmul %118, %119, %cst_40 {dimension_numbers = #tpu.dot_dimension_numbers<[1], [1], [0], [0], [0, 0, 1, 0], [], []>} : vector<10x32xbf16>, vector<32x32xbf16>, vector<10x32xf32> -> vector<10x32xf32>
    %121 = arith.addf %120, %33 : vector<10x32xf32>
    %cst_41 = arith.constant dense<0xFF800000> : vector<10xf32>
    %122 = vector.multi_reduction <maximumf>, %121, %cst_41 [1] : vector<10x32xf32> to vector<10xf32>
    %123 = vector.shape_cast %122 : vector<10xf32> to vector<10x1xf32>
    %124 = vector.broadcast %123 : vector<10x1xf32> to vector<10x32xf32>
    %125 = arith.subf %121, %124 : vector<10x32xf32>
    %126 = tpu.concatenate %101, %109, %117, %125 in 1 : vector<10x32xf32>, vector<10x32xf32>, vector<10x32xf32>, vector<10x32xf32> -> vector<10x128xf32>
    %127 = math.exp %126 : vector<10x128xf32>
    %c0_42 = arith.constant 0 : index
    %c0_43 = arith.constant 0 : index
    %128 = vector.load %arg9[%c0_42, %c0_43] : memref<128x128xf32, #tpu.memory_space<vmem>>, vector<128x128xf32>
    %cst_44 = arith.constant dense<0.000000e+00> : vector<10x128xf32>
    %129 = tpu.matmul %127, %128, %cst_44 {dimension_numbers = #tpu.dot_dimension_numbers<[1], [0], [0], [1], [0, 0, 1, 1], [], []>} : vector<10x128xf32>, vector<128x128xf32>, vector<10x128xf32> -> vector<10x128xf32>
    %130 = tpu.reciprocal %129 {approx = true} : vector<10x128xf32> -> vector<10x128xf32>
    %131 = arith.mulf %127, %130 : vector<10x128xf32>
    %132 = arith.mulf %131, %131 : vector<10x128xf32>
    %133 = arith.mulf %132, %132 : vector<10x128xf32>
    %c0_45 = arith.constant 0 : index
    %c0_46 = arith.constant 0 : index
    %134 = vector.load %arg10[%c0_45, %c0_46] : memref<8x10xf32, #tpu.memory_space<vmem>>, vector<8x10xf32>
    %cst_47 = arith.constant dense<0.000000e+00> : vector<8x128xf32>
    %135 = tpu.matmul %134, %133, %cst_47 {dimension_numbers = #tpu.dot_dimension_numbers<[1], [0], [0], [1], [0, 0, 1, 1], [], []>} : vector<8x10xf32>, vector<10x128xf32>, vector<8x128xf32> -> vector<8x128xf32>
    %136 = math.sqrt %135 : vector<8x128xf32>
    %137 = math.sqrt %136 : vector<8x128xf32>
    %138 = vector.extract_strided_slice %137 {offsets = [0, 0], sizes = [8, 32], strides = [1, 1]} : vector<8x128xf32> to vector<8x32xf32>
    %139 = vector.extract_strided_slice %137 {offsets = [0, 32], sizes = [8, 32], strides = [1, 1]} : vector<8x128xf32> to vector<8x32xf32>
    %140 = arith.addf %138, %139 : vector<8x32xf32>
    %141 = vector.extract_strided_slice %137 {offsets = [0, 64], sizes = [8, 32], strides = [1, 1]} : vector<8x128xf32> to vector<8x32xf32>
    %142 = arith.addf %140, %141 : vector<8x32xf32>
    %143 = vector.extract_strided_slice %137 {offsets = [0, 96], sizes = [8, 32], strides = [1, 1]} : vector<8x128xf32> to vector<8x32xf32>
    %144 = arith.addf %142, %143 : vector<8x32xf32>
    %cst_48 = arith.constant 2.500000e-01 : f32
    %145 = vector.broadcast %cst_48 : f32 to vector<8x32xf32>
    %146 = arith.mulf %144, %145 : vector<8x32xf32>
    %cst_49 = arith.constant dense<0.000000e+00> : vector<8x128xf32>
    %147 = tpu.matmul %146, %7, %cst_49 {dimension_numbers = #tpu.dot_dimension_numbers<[1], [0], [0], [1], [0, 0, 1, 1], [], []>} : vector<8x32xf32>, vector<32x128xf32>, vector<8x128xf32> -> vector<8x128xf32>
    %c0_50 = arith.constant 0 : index
    %c0_51 = arith.constant 0 : index
    %148 = vector.load %arg11[%c0_50, %c0_51] : memref<8x128xf32, #tpu.memory_space<vmem>>, vector<8x128xf32>
    tpu.vector_store %arg11[%c0_50, %c0_51], %147 {strides = array<i32>} : memref<8x128xf32, #tpu.memory_space<vmem>>, vector<8x128xf32>,
    return
  }
}

</mosaic_0001>

<bundles_post_ra>
// kernel: attention_mixer_forward.1
= control target key start
LH: loop header
LB: loop body
LE: loop exit
PB: predicated region body
PF: predicated region fallthrough
CT: control target
= control target key end

     0   :  { %16 = vsyncpa [#allocation4], 0  ;;  %s1989_s0 = inlined_call_operand.vmem [shape: s32[2], index: 0, kind: input, shape index: {}]   ;;  %s1990_s1 = inlined_call_operand.vmem [shape: s32[32,1], index: 1, kind: input, shape index: {}]   ;;  %s1991_s2 = inlined_call_operand.hbm [shape: f32[64,128], index: 2, kind: input, shape index: {}]   ;;  %s1992_s3 = inlined_call_operand.vmem [shape: bf16[32,160], index: 3, kind: input, shape index: {}]   ;;  %s1993_s4 = inlined_call_operand.vmem [shape: bf16[32,128], index: 4, kind: input, shape index: {}]   ;;  %s1994_s5 = inlined_call_operand.vmem [shape: bf16[32,128], index: 5, kind: input, shape index: {}]   ;;  %s1995_s6 = inlined_call_operand.vmem [shape: s32[10,1], index: 6, kind: input, shape index: {}]   ;;  %s1996_s7 = inlined_call_operand.hbm [shape: s32[2,32], index: 7, kind: input, shape index: {}]   ;;  %s1997_s8 = inlined_call_operand.hbm [shape: f32[10,32], index: 8, kind: input, shape index: {}]   ;;  %s1998_s9 = inlined_call_operand.hbm [shape: f32[128,128], index: 9, kind: input, shape index: {}]   ;;  %s1999_s10 = inlined_call_operand.hbm [shape: f32[8,10], index: 10, kind: input, shape index: {}]   ;;  %s2000_s11 = inlined_call_operand.vmem [shape: f32[8,128], index: 11, kind: output, shape index: {}]  }
   0x1   :  { %17 = vsyncpa [#allocation3], 0 }
   0x2   :  { %18 = vsyncpa [#allocation7], 0 }
   0x3   :  { %19 = vsyncpa [#allocation10], 0  ;;  %s1665_s17 = smov [#allocation6]  }
   0x4   :  { %s58_s18 = sshll.u32 %s1665_s17, 4  ;;  %s59_s18 = int_to_ptr.vmem [resolvable:$true] %s58_s18 }
   0x5   :  { %s1553_s19 = scalar_lea.vmem %s59_s18, 32  ;;  %p1558_p1 = scmp.lt.s32.totalorder %s59_s18, %s59_s18 }
   0x6   :  { %p1554_p0 = scmp.ne.s32.totalorder %s59_s18, %s1553_s19  ;;  %p1559_p2 = scmp.lt.s32.totalorder %s1553_s19, %s1553_s19 }
   0x8   :  { %p1560_p3 = por %p1559_p2, %p1558_p1 }
   0xa   :  { %p1561_p4 = pnand %p1560_p3, %p1554_p0 }
   0xc   :  { %1564 = shalt.err (!%p1561_p4)
}
   0xd   :  { %61 = dma.hbm_to_vmem [thread:$0]  %s1996_s7, 32, %s59_s18, [#allocation7]  }
   0xe   :  { %s1666_s22 = smov [#allocation9]   ;;  %s26_s26 = sshll.u32 %s1989_s0, 4  ;;  %s27_s26 = int_to_ptr.vmem [resolvable:$true] %s26_s26 }
   0xf   :  { %s79_s23 = sshll.u32 %s1666_s22, 4  ;;  %s80_s23 = int_to_ptr.vmem [resolvable:$true] %s79_s23 }
  0x10   :  { %s1573_s27 = scalar_lea.vmem %s80_s23, 2048  ;;  %p1578_p6 = scmp.lt.s32.totalorder %s80_s23, %s80_s23 }
  0x11   :  { %p1574_p5 = scmp.ne.s32.totalorder %s80_s23, %s1573_s27  ;;  %p1579_p7 = scmp.lt.s32.totalorder %s1573_s27, %s1573_s27 }
  0x13   :  { %p1580_p8 = por %p1579_p7, %p1578_p6 }
  0x15   :  { %p1581_p9 = pnand %p1580_p8, %p1574_p5 }
  0x17   :  { %1584 = shalt.err (!%p1581_p9)
}
  0x18   :  { %s1667_s28 = smov 128   ;;  %s1668_s29 = smov 8  }
  0x19   :  { %85 = dma.hbm_to_vmem [thread:$0]  %s1998_s9, 2048, %s80_s23, [#allocation10], %s1667_s28, %s1667_s28, %s1668_s29  }
  0x1a   :  { %s1585_s12 = scalar_lea.vmem %s27_s26, 16  ;;  %p1590_p11 = scmp.lt.s32.totalorder %s27_s26, %s27_s26 }
  0x1b   :  { %p1586_p10 = scmp.ne.s32.totalorder %s27_s26, %s1585_s12  ;;  %p1591_p12 = scmp.lt.s32.totalorder %s1585_s12, %s1585_s12 }
  0x1d   :  { %p1592_p13 = por %p1591_p12, %p1590_p11 }
  0x1f   :  { %p1593_p0 = pnand %p1592_p13, %p1586_p10 }
  0x21   :  { %1596 = shalt.err (!%p1593_p0)
}
  0x22   :  { %s1669_s0 = smov [#allocation2]   ;;  %s1670_s13 = smov [#allocation5]  }
  0x23   :  { %29 = dma.vmem_to_smem %s27_s26, 16, %s1669_s0, [#allocation4]  }
  0x24   :  { %s37_s14 = sshll.u32 %s1670_s13, 4  ;;  %s1671_s15 = smov [#allocation8]   ;;  %s38_s14 = int_to_ptr.vmem [resolvable:$true] %s37_s14 }
  0x25   :  { %s67_s16 = sshll.u32 %s1671_s15, 4  ;;  %s1605_s17 = scalar_lea.vmem %s38_s14, 1024  ;;  %s68_s16 = int_to_ptr.vmem [resolvable:$true] %s67_s16 }
  0x26   :  { %p1606_p1 = scmp.ne.s32.totalorder %s38_s14, %s1605_s17  ;;  %p1610_p2 = scmp.lt.s32.totalorder %s38_s14, %s38_s14 }
  0x27   :  { %p1611_p3 = scmp.lt.s32.totalorder %s1605_s17, %s1605_s17 }
  0x29   :  { %p1612_p4 = por %p1611_p3, %p1610_p2 }
  0x2b   :  { %p1613_p5 = pnand %p1612_p4, %p1606_p1 }
  0x2d   :  { %1616 = shalt.err (!%p1613_p5)
}
  0x2e   :  { %43 = dma.hbm_to_vmem [thread:$0]  %s1991_s2, 1024, %s38_s14, [#allocation3], %s1667_s28, %s1667_s28, %s1668_s29  }
  0x2f   :  { %s1625_s19 = scalar_lea.vmem %s68_s16, 256  ;;  %p1630_p7 = scmp.lt.s32.totalorder %s68_s16, %s68_s16 }
  0x30   :  { %p1626_p6 = scmp.ne.s32.totalorder %s68_s16, %s1625_s19  ;;  %p1631_p8 = scmp.lt.s32.totalorder %s1625_s19, %s1625_s19 }
  0x32   :  { %p1632_p9 = por %p1631_p8, %p1630_p7 }
  0x34   :  { %p1633_p10 = pnand %p1632_p9, %p1626_p6 }
  0x36   :  { %1636 = shalt.err (!%p1633_p10)
}
  0x37   :  { %73 = dma.hbm_to_vmem [thread:$0]  %s1997_s8, 256, %s68_s16, [#allocation7], %s1667_s28, %s1667_s28, %s1668_s29  }
  0x38   :  { %s1672_s22 = smov [#allocation11]  }
  0x39   :  { %s92_s23 = sshll.u32 %s1672_s22, 4  ;;  %s93_s23 = int_to_ptr.vmem [resolvable:$true] %s92_s23 }
  0x3a   :  { %s1645_s24 = scalar_lea.vmem %s93_s23, 128  ;;  %p1650_p12 = scmp.lt.s32.totalorder %s93_s23, %s93_s23 }
  0x3b   :  { %p1646_p11 = scmp.ne.s32.totalorder %s93_s23, %s1645_s24  ;;  %p1651_p13 = scmp.lt.s32.totalorder %s1645_s24, %s1645_s24 }
  0x3d   :  { %p1652_p0 = por %p1651_p13, %p1650_p12 }
  0x3f   :  { %p1653_p1 = pnand %p1652_p0, %p1646_p11 }
  0x41   :  { %1656 = shalt.err (!%p1653_p1)
}
  0x42   :  { %95 = dma.hbm_to_vmem [thread:$0]  %s1999_s10, 128, %s93_s23, [#allocation10]  }
  0x43   :  { %1657 = dma.done.wait [#allocation4], 16  }
  0x44   :  { %1658 = vsyncadd [#allocation4], 4294967280 }
  0x45   :  { %1659 = dma.done.wait [#allocation3], 1024  }
  0x46   :  { %1660 = vsyncadd [#allocation3], 4294966272 }
  0x47   :  { %1661 = dma.done.wait [#allocation7], 288  }
  0x48   :  { %1662 = vsyncadd [#allocation7], 4294967008 }
  0x49   :  { %1663 = dma.done.wait [#allocation10], 2176  }
  0x4a   :  { %1664 = vsyncadd [#allocation10], 4294965120 }
  0x4b   :  { %114 = sfence }
  0x4c   :  { %v120_v0 = vld [vmem:[%s1990_s1 + $0x10] sm:$0xff]  ;;  %v118_v1 = vld [vmem:[%s1990_s1] sm:$0xff]  ;;  %v1673_v2 = vmov 0   ;;  %v153_v3 = vld [vmem:[#allocation5 + $0x38] sm:$0xff]  ;;  %v1674_v23 = vmov 0.0   ;;  %v116_v31 = vlaneseq  ;;  %vm154_vm13 = vcmask 523264  }
  0x4d   :  { %1522 = vset.pattern.permute.xlu1 %v1673_v2  ;;  %1521 = vset.pattern.permute.xlu0 %v1673_v2  ;;  %v152_v4 = vld [vmem:[#allocation5 + $0x30] sm:$0xff]  ;;  %v121_v5 = vld [vmem:[%s1990_s1 + $0x18] sm:$0xff]  ;;  %v119_v6 = vld [vmem:[%s1990_s1 + $0x8] sm:$0xff]  ;;  %s257_s1 = sld [smem:[#allocation2]]  ;;  %s1676_s25 = smov 64  }
  0x4e   :  { %129 = vperm.xlu1 %1522, %v120_v0   ;;  %123 = vperm.xlu0 %1521, %v118_v1   ;;  %v266_v7 = vld [vmem:[%s1995_s6 + $0x8] sm:$0x3]  ;;  %v265_v9 = vld [vmem:[%s1995_s6] sm:$0xff]  ;;  %v149_v13 = vld [vmem:[#allocation5 + $0x18] sm:$0xff]  ;;  %s1285_s6 = sld [smem:[#allocation2 + $0x1]]  ;;  %v117_v33 = vand.u32 127, %v116_v31 }
  0x4f   :  { %1373 = vmatprep.subr.mxu0 %v153_v3  ;;  %v151_v8 = vld [vmem:[#allocation5 + $0x28] sm:$0xff]  ;;  %vm478_vm0 = vcmp.eq.s32.totalorder %v266_v7, 1  ;;  %vm477_vm1 = vcmp.eq.s32.totalorder %v265_v9, 1  ;;  %v150_v10 = vld [vmem:[#allocation5 + $0x20] sm:$0xff]  ;;  %vm502_vm2 = vcmp.eq.s32.totalorder %v266_v7, 2  ;;  %vm501_vm3 = vcmp.eq.s32.totalorder %v265_v9, 2 }
  0x50   :  { %1374 = vmatpush3.msra.mxu0 %v153_v3  ;;  %v480_v11 = vsel %vm478_vm0, 1, %v1673_v2  ;;  %v479_v12 = vsel %vm477_vm1, 1, %v1673_v2  ;;  %v148_v14 = vld [vmem:[#allocation5 + $0x10] sm:$0xff]  ;;  %v504_v15 = vsel %vm502_vm2, 1, %v1673_v2  ;;  %v503_v16 = vsel %vm501_vm3, 1, %v1673_v2  ;;  %v147_v17 = vld [vmem:[#allocation5 + $0x8] sm:$0xff] }
  0x51   :  { %1375 = vmatprep.subr.mxu0 %v152_v4  ;;  %vm526_vm4 = vcmp.eq.s32.totalorder %v266_v7, 3  ;;  %vm525_vm5 = vcmp.eq.s32.totalorder %v265_v9, 3  ;;  %v146_v18 = vld [vmem:[#allocation5] sm:$0xff]  ;;  %vm464_vm6 = vcmp.eq.s32.totalorder %v266_v7, 0  ;;  %vm463_vm7 = vcmp.eq.s32.totalorder %v265_v9, 0 }
  0x52   :  { %132 = vperm.xlu1 %1522, %v121_v5   ;;  %126 = vperm.xlu0 %1521, %v119_v6   ;;  %v528_v19 = vsel %vm526_vm4, 1, %v1673_v2  ;;  %v527_v20 = vsel %vm525_vm5, 1, %v1673_v2  ;;  %v466_v21 = vsel %vm464_vm6, 1, %v1673_v2  ;;  %v465_v22 = vsel %vm463_vm7, 1, %v1673_v2  ;;  %v255_v26 = vld [vmem:[#allocation6 + $0x1] sm:$0x1] }
  0x53   :  { %1376 = vmatpush3.msra.mxu0 %v152_v4  ;;  %vm550_vm8 = vcmp.eq.s32.totalorder %v266_v7, 4  ;;  %vm549_vm9 = vcmp.eq.s32.totalorder %v265_v9, 4  ;;  %vm256_vm10 = vcmp.eq.s32.totalorder %v255_v26, 0  ;;  %v258_v27 = vstv %s257_s1  ;;  %v254_v37 = vld [vmem:[#allocation6] sm:$0x1]  ;;  %v1804_v49 = vld [vmem:[#allocation8] sm:$0xff] }
  0x54   :  { %1377 = vmatprep.subr.mxu0 %v151_v8  ;;  %v552_v24 = vsel %vm550_vm8, 1, %v1673_v2  ;;  %v551_v25 = vsel %vm549_vm9, 1, %v1673_v2  ;;  %v259_v28 = vsel %vm256_vm10, %v258_v27, 0  ;;  %vm260_vm11 = vcmp.eq.s32.totalorder %v255_v26, 1  ;;  %v1806_v53 = vld [vmem:[#allocation8 + $0x8] sm:$0x3] }
  0x55   :  { %1378 = vmatpush3.msra.mxu0 %v151_v8  ;;  %v262_v29 = vstv %s1285_s6  ;;  %v268_v34 = vshrl.u32 %v116_v31, 7  ;;  %vm287_vm5 = vcmp.gt.f32.partialorder %v1804_v49, -1.0  ;;  %vm288_vm6 = vcmp.gt.f32.partialorder %v1806_v53, -1.0  ;;  %v1525_v1 = vld [vmem:[%s1992_s3 + $0x14] ss:$8 sps:$4 sm:$0xff]  }
  0x56   :  { %275 = vperm.xlu1 %1522, %v266_v7   ;;  %272 = vperm.xlu0 %1521, %v265_v9   ;;  %v263_v30 = vsel %vm260_vm11, %v262_v29, %v259_v28  ;;  %v1523_v3 = vld [vmem:[%s1992_s3 + $0x10] ss:$8 sps:$4 sm:$0xff]   ;;  %v1526_v5 = vld [vmem:[%s1992_s3] ss:$8 sps:$4 sm:$0xff]   ;;  %v1528_v6 = vld [vmem:[%s1992_s3 + $0x4] ss:$8 sps:$4 sm:$0xff]  }
  0x57   :  { %1379 = vmatprep.subr.mxu0 %v150_v10  ;;  %v1286_v32 = vadd.s32 4294967295, %v263_v30  ;;  %v269_v39 = vsub.s32 0, %v268_v34  ;;  %s1675_s3 = smov 96  }
  0x58   :  { %1380 = vmatpush3.msra.mxu0 %v150_v10 }
  0x59   :  { %1381 = vmatprep.subr.mxu0 %v149_v13  ;;  %vm283_vm12 = vcmp.gt.s32.totalorder %v1286_v32, 0  ;;  %v270_v44 = vrot.slane %v1286_v32, %v269_v39  ;;  %v292_v51 = vrot.slane %v254_v37, %v269_v39 }
  0x5a   :  { %485 = vperm.xlu1 %1522, %v480_v11   ;;  %482 = vperm.xlu0 %1521, %v479_v12   ;;  %v284_v38 = vsel %vm283_vm12, %v1286_v32, 0  ;;  %vm310_vm12 = vcmask 261120   ;;  %v1529_v12 = vld [vmem:[%s1993_s4 + $0x8] sm:$0xff]  }
  0x5b   :  { %1382 = vmatpush3.msra.mxu0 %v149_v13  ;;  %vm297_vm0 = vcmp.le.s32.totalorder %v254_v37, %v284_v38 }
  0x5c   :  { %1383 = vmatprep.subr.mxu0 %v148_v14  ;;  %v298_v46 = vsel %vm297_vm0, 1, %v1673_v2 }
  0x5d   :  { %1384 = vmatpush3.msra.mxu0 %v148_v14  ;;  %v302_v54 = vrot.slane %v298_v46, %v269_v39 }
  0x5e   :  { %509 = vperm.xlu1 %1522, %v504_v15   ;;  %506 = vperm.xlu0 %1521, %v503_v16  }
  0x5f   :  { %1385 = vmatprep.subr.mxu0 %v147_v17  ;;  %vm1812_vm9 = vcmp.eq.s32.totalorder %v302_v54, 1  ;;  %v1532_v54 = vld [vmem:[%s1994_s5] sm:$0xff]  }
  0x60   :  { %1386 = vmatpush3.msra.mxu0 %v147_v17 }
  0x61   :  { %1387 = vmatprep.subr.mxu0 %v146_v18 }
  0x62   :  { %533 = vperm.xlu1 %1522, %v528_v19   ;;  %530 = vperm.xlu0 %1521, %v527_v20  }
  0x63   :  { %1388 = vmatpush3.msra.mxu0 %v146_v18  ;;  %v1530_v18 = vld [vmem:[%s1993_s4] sm:$0xff]   ;;  %s1678_s4 = smov 32  }
  0x64   :  { %1422 = vmatprep.subr.bf16.mxu0 %v1674_v23 }
  0x66   :  { %471 = vperm.xlu1 %1522, %v466_v21   ;;  %468 = vperm.xlu0 %1521, %v465_v22   ;;  %v1531_v22 = vld [vmem:[%s1994_s5 + $0x8] sm:$0xff]  }
  0x6a   :  { %557 = vperm.xlu1 %1522, %v552_v24   ;;  %554 = vperm.xlu0 %1521, %v551_v25  }
  0xc9   :  { %v130_v35 = vpop.permute.xlu1 %129  ;;  %v124_v36 = vpop.permute.xlu0 %123 }
  0xca   :  { %vm134_vm14 = vcmp.eq.s32.totalorder %v124_v36, %v117_v33  ;;  %vm136_vm15 = vcmp.eq.s32.totalorder %v130_v35, %v117_v33 }
  0xcb   :  { %v1277_v40 = vsel %vm134_vm14, 1.0, %v1674_v23  ;;  %v1279_v43 = vsel %vm136_vm15, 1.0, %v1674_v23 }
  0xcc   :  { %1389 = vmatprep.mubr.msk.f32.mxu0 %vm154_vm13, %v1277_v40 }
  0xcd   :  { %v133_v41 = vpop.permute.xlu1 %132  ;;  %v127_v42 = vpop.permute.xlu0 %126 }
  0xce   :  { %vm135_vm1 = vcmp.eq.s32.totalorder %v127_v42, %v117_v33  ;;  %vm137_vm2 = vcmp.eq.s32.totalorder %v133_v41, %v117_v33 }
  0xcf   :  { %v1278_v45 = vsel %vm135_vm1, 1.0, %v1674_v23  ;;  %v1280_v55 = vsel %vm137_vm2, 1.0, %v1674_v23 }
  0xd0   :  { %1390 = vmatmul.mubr.msk.f32.vlgmr.msra.gmra.mxu0 %vm154_vm13, %v1278_v45 }
  0xd1   :  { %v276_v47 = vpop.permute.xlu1 %275  ;;  %v273_v48 = vpop.permute.xlu0 %272  ;;  %1392 = vmatprep.mubr.msk.f32.mxu0 %vm154_vm13, %v1279_v43 }
  0xd2   :  { %v278_v50 = vsub.s32 %v270_v44, %v276_v47  ;;  %v277_v52 = vsub.s32 %v270_v44, %v273_v48 }
  0xd4   :  { %vm281_vm3 = vcmp.gt.s32.totalorder %v278_v50, 0  ;;  %vm279_vm4 = vcmp.gt.s32.totalorder %v277_v52, 0  ;;  %1393 = vmatmul.mubr.msk.f32.gmra.mxu0 %vm154_vm13, %v1280_v55 }
  0xd5   :  { %v282_v56 = vsel %vm281_vm3, %v278_v50, 0  ;;  %v280_v57 = vsel %vm279_vm4, %v277_v52, 0  ;;  %v483_v10 = vpop.permute.xlu0 %482  ;;  %v486_v11 = vpop.permute.xlu1 %485  ;;  %vm1677_vm3 = vmmov 0  }
  0xd6   :  { %vm294_vm7 = vcmp.ge.s32.totalorder %v292_v51, %v282_v56  ;;  %vm293_vm8 = vcmp.ge.s32.totalorder %v292_v51, %v280_v57  ;;  %vm487_vm0 = vcmp.eq.s32.totalorder %v483_v10, 1  ;;  %vm488_vm1 = vcmp.eq.s32.totalorder %v486_v11, 1  ;;  %1426 = vmatprep.mubr.msk.bf16.mxu0 %vm1677_vm3, %v1674_v23 }
  0xd7   :  { %vm295_vm10 = vmand %vm287_vm5, %vm293_vm8 }
  0xd8   :  { %vm1816_vm11 = vmand %vm288_vm6, %vm294_vm7 }
  0xd9   :  { %vm304_vm14 = vmand %vm295_vm10, %vm1812_vm9  ;;  %v510_v16 = vpop.permute.xlu1 %509 }
  0xda   :  { %vm305_vm15 = vmand %vm1816_vm11, %vm1812_vm9  ;;  %v1287_v60 = vsel %vm304_vm14, 1.0, %v1674_v23  ;;  %vm512_vm4 = vcmp.eq.s32.totalorder %v510_v16, 1  ;;  %vm753_vm11 = vcmask 254976   ;;  %vm982_vm14 = vcmask 785408  }
  0xdb   :  { %1403 = vmatprep.mubr.msk.f32.mxu1 %vm310_vm12, %v1287_v60  ;;  %v1288_v4 = vsel %vm305_vm15, 1.0, %v1674_v23  ;;  %vm1093_vm15 = vcmask 1041408  }
  0xdd   :  { %v534_v24 = vpop.permute.xlu1 %533 }
  0xde   :  { %vm536_vm6 = vcmp.eq.s32.totalorder %v534_v24, 1 }
  0xe1   :  { %v472_v29 = vpop.permute.xlu1 %471 }
  0xe2   :  { %vm474_vm8 = vcmp.eq.s32.totalorder %v472_v29, 1 }
  0xe5   :  { %v558_v31 = vpop.permute.xlu1 %557 }
  0xe6   :  { %vm560_vm10 = vcmp.eq.s32.totalorder %v558_v31, 1 }
 0x190   :  { %v1828_v61 = vpop.f32.mrf.mxu0 }
 0x192   :  { %v1830_v62 = vpop.f32.mrf.mxu0 }
 0x193   :  { %v252_v55 = vpack.c.bf16 %v1828_v61, %v1830_v62 }
 0x194   :  { %v1832_v63 = vpop.f32.mrf.mxu0 }
 0x195   :  { %1395 = vmatprep.subr.mxu1 %v1832_v63 }
 0x196   :  { %v1835_v0 = vpop.f32.mrf.mxu0  ;;  %1396 = vmatpush3.msra.mxu1 %v1832_v63 }
 0x197   :  { %1397 = vmatprep.subr.mxu1 %v1835_v0  ;;  %v253_v56 = vpack.c.bf16 %v1832_v63, %v1835_v0 }
 0x198   :  { %1398 = vmatpush3.msra.mxu1 %v1835_v0 }
 0x199   :  { %1399 = vmatprep.subr.mxu1 %v1828_v61 }
 0x19a   :  { %1400 = vmatpush3.msra.mxu1 %v1828_v61 }
 0x19b   :  { %1401 = vmatprep.subr.mxu1 %v1830_v62 }
 0x19c   :  { %1402 = vmatpush3.msra.mxu1 %v1830_v62 }
 0x19d   :  { %1404 = vmatmul.mubr.msk.f32.vlgmr.msra.gmra.mxu1 %vm310_vm12, %v1288_v4  ;;  %432 = vmatprep.subr.bf16.mxu1 %v1525_v1 }
 0x19e   :  { %433 = vmatpush1.bf16.msra.mxu1 %v1523_v3  ;;  %452 = vmatprep.mubr.bf16.mxu1 %v1673_v2  ;;  %v507_v2 = vpop.permute.xlu0 %506 }
 0x19f   :  { %434 = vmatprep.subr.bf16.mxu1 %v1528_v6  ;;  %vm511_vm2 = vcmp.eq.s32.totalorder %v507_v2, 1 }
 0x1a2   :  { %435 = vmatpush1.bf16.msra.mxu1 %v1526_v5  ;;  %v531_v19 = vpop.permute.xlu0 %530 }
 0x1a3   :  { %1406 = vmatprep.subr.bf16.mxu1 %v1674_v23  ;;  %vm535_vm5 = vcmp.eq.s32.totalorder %v531_v19, 1 }
 0x1a6   :  { %v469_v28 = vpop.permute.xlu0 %468 }
 0x1a7   :  { %vm473_vm7 = vcmp.eq.s32.totalorder %v469_v28, 1 }
 0x1aa   :  { %v555_v30 = vpop.permute.xlu0 %554 }
 0x1ab   :  { %vm559_vm9 = vcmp.eq.s32.totalorder %v555_v30, 1 }
 0x25d   :  { %v1405_v7 = vpop.f32.mrf.mxu1 }
 0x25f   :  { %v383_v8 = vpop.f32.mrf.mxu1 }
 0x260   :  { %v392_v9 = vpack.c.bf16 %v1405_v7, %v383_v8 }
 0x262   :  { %1295 = vmatmul.mubr.msk.bf16.vlgmr.msra.gmra.mxu1 %vm310_vm12, %v392_v9 }
 0x263   :  { %1407 = vmatpush3.bf16.msra.mxu1 %v1529_v12  ;;  %1410 = vmatprep.mubr.msk.bf16.mxu1 %vm1677_vm3, %v1674_v23 }
 0x264   :  { %1408 = vmatprep.subr.bf16.mxu1 %v1674_v23 }
 0x267   :  { %1409 = vmatpush3.bf16.msra.mxu1 %v1530_v18 }
 0x268   :  { %1414 = vmatprep.subr.bf16.mxu1 %v1531_v22 }
 0x322   :  { %v454_v13 = vpop.f32.mrf.mxu1 }
 0x323   :  { %v489_v14 = vsel %vm487_vm0, %v454_v13, 0.0  ;;  %v513_v20 = vsel %vm511_vm2, %v454_v13, 0.0  ;;  %v537_v25 = vsel %vm535_vm5, %v454_v13, 0.0  ;;  %v475_v33 = vsel %vm473_vm7, %v454_v13, 0.0 }
 0x324   :  { %493 = vrot.lane.b32.xlu0 %v489_v14, %s1675_s3  ;;  %v456_v15 = vpop.f32.mrf.mxu1 }
 0x325   :  { %v561_v43 = vsel %vm559_vm9, %v456_v15, 0.0 }
 0x326   :  { %v458_v17 = vpop.f32.mrf.mxu1 }
 0x327   :  { %v490_v21 = vsel %vm488_vm1, %v458_v17, 0.0  ;;  %v514_v26 = vsel %vm512_vm4, %v458_v17, 0.0  ;;  %v538_v27 = vsel %vm536_vm6, %v458_v17, 0.0  ;;  %v476_v38 = vsel %vm474_vm8, %v458_v17, 0.0 }
 0x328   :  { %517 = vrot.lane.b32.xlu0 %v513_v20, %s1676_s25  ;;  %495 = vrot.lane.b32.xlu1 %v490_v21, %s1675_s3  ;;  %v460_v44 = vpop.f32.mrf.mxu1 }
 0x329   :  { %v562_v50 = vsel %vm560_vm10, %v460_v44, 0.0 }
 0x32c   :  { %541 = vrot.lane.b32.xlu0 %v537_v25, %s1678_s4  ;;  %519 = vrot.lane.b32.xlu1 %v514_v26, %s1676_s25 }
 0x330   :  { %543 = vrot.lane.b32.xlu1 %v538_v27, %s1678_s4 }
 0x396   :  { %v494_v32 = vpop.permute.xlu0 %493 }
 0x397   :  { %v499_v36 = vadd.f32 %v494_v32, %v475_v33 }
 0x39a   :  { %v518_v34 = vpop.permute.xlu0 %517  ;;  %v496_v35 = vpop.permute.xlu1 %495 }
 0x39b   :  { %v523_v37 = vadd.f32 %v518_v34, %v499_v36  ;;  %v500_v41 = vadd.f32 %v496_v35, %v476_v38 }
 0x39e   :  { %v542_v39 = vpop.permute.xlu0 %541  ;;  %v520_v40 = vpop.permute.xlu1 %519 }
 0x39f   :  { %v547_v42 = vadd.f32 %v542_v39, %v523_v37  ;;  %v524_v46 = vadd.f32 %v520_v40, %v500_v41 }
 0x3a1   :  { %v563_v45 = vadd.f32 %v561_v43, %v547_v42 }
 0x3a2   :  { %v544_v47 = vpop.permute.xlu1 %543 }
 0x3a3   :  { %v548_v48 = vadd.f32 %v544_v47, %v524_v46 }
 0x3a5   :  { %v564_v51 = vadd.f32 %v562_v50, %v548_v48 }
 0x3a7   :  { %v565_v52 = vpack.c.bf16 %v564_v51, %v563_v45 }
 0x3a9   :  { %1411 = vmatmul.mubr.msk.bf16.vlgmr.msra.gmra.mxu1 %vm310_vm12, %v565_v52 }
 0x3aa   :  { %1415 = vmatpush3.bf16.msra.mxu1 %v1531_v22  ;;  %1418 = vmatprep.mubr.msk.bf16.mxu1 %vm310_vm12, %v252_v55 }
 0x3ab   :  { %1416 = vmatprep.subr.bf16.mxu1 %v1532_v54 }
 0x3ae   :  { %1417 = vmatpush3.bf16.msra.mxu1 %v1532_v54 }
 0x3af   :  { %1430 = vmatprep.subr.bf16.mxu1 %v1674_v23 }
 0x3b1   :  { %1419 = vmatmul.mubr.msk.bf16.vlgmr.msra.gmra.mxu1 %vm310_vm12, %v253_v56 }
 0x3b2   :  { %1434 = vmatprep.mubr.msk.bf16.mxu1 %vm1677_vm3, %v1674_v23 }
 0x469   :  { %v619_v57 = vpop.f32.mrf.mxu1 }
 0x46b   :  { %v1412_v58 = vpop.f32.mrf.mxu1 }
 0x46d   :  { %v622_v59 = vpop.f32.mrf.mxu1 }
 0x46e   :  { %v697_v9 = vpack.c.bf16 %v622_v59, %v619_v57  ;;  %v1004_v59 = vld [vmem:[#allocation9 + $0x78] sm:$0xff] }
 0x46f   :  { %v1413_v60 = vpop.f32.mrf.mxu1 }
 0x470   :  { %v1003_v60 = vld [vmem:[#allocation9 + $0x70] sm:$0xff] }
 0x471   :  { %v1420_v1 = vpop.f32.mrf.mxu1 }
 0x473   :  { %v682_v3 = vpop.f32.mrf.mxu1 }
 0x475   :  { %v1421_v4 = vpop.f32.mrf.mxu1 }
 0x476   :  { %v699_v5 = vpack.c.bf16 %v1421_v4, %v1420_v1  ;;  %v1001_v1 = vld [vmem:[#allocation9 + $0x60] sm:$0xff]  ;;  %v1000_v4 = vld [vmem:[#allocation9 + $0x58] sm:$0xff] }
 0x477   :  { %v685_v6 = vpop.f32.mrf.mxu1 }
 0x478   :  { %v698_v7 = vpack.c.bf16 %v685_v6, %v682_v3  ;;  %766 = vrot.lane.b32.xlu0 %v699_v5, %s1675_s3  ;;  %v707_v8 = vsel %vm310_vm12, %v699_v5, 0  ;;  %v999_v6 = vld [vmem:[#allocation9 + $0x50] sm:$0xff] }
 0x479   :  { %1423 = vmatpush3.bf16.xpose.msra.mxu0 %v707_v8 }
 0x47a   :  { %764 = vrot.lane.b32.xlu1 %v698_v7, %s1675_s3  ;;  %1424 = vmatprep.subr.bf16.mxu0 %v1674_v23  ;;  %v704_v10 = vsel %vm310_vm12, %v698_v7, 0 }
 0x47c   :  { %830 = vrot.lane.b32.xlu0 %v699_v5, %s1676_s25 }
 0x47e   :  { %894 = vrot.lane.b32.xlu1 %v699_v5, %s1678_s4 }
 0x480   :  { %760 = vrot.lane.b32.xlu0 %v697_v9, %s1675_s3 }
 0x481   :  { %1425 = vmatpush3.bf16.xpose.msra.mxu0 %v704_v10 }
 0x482   :  { %828 = vrot.lane.b32.xlu1 %v698_v7, %s1676_s25  ;;  %1438 = vmatprep.subr.bf16.mxu0 %v1674_v23 }
 0x484   :  { %892 = vrot.lane.b32.xlu0 %v698_v7, %s1678_s4 }
 0x486   :  { %826 = vrot.lane.b32.xlu1 %v697_v9, %s1676_s25 }
 0x488   :  { %890 = vrot.lane.b32.xlu0 %v697_v9, %s1678_s4  ;;  %1427 = vmatmul.mubr.msk.bf16.vlgmr.msra.gmra.mxu0 %vm310_vm12, %v697_v9 }
 0x489   :  { %1442 = vmatprep.mubr.msk.bf16.mxu0 %vm1677_vm3, %v1674_v23 }
 0x4ea   :  { %v767_v11 = vpop.permute.xlu0 %766 }
 0x4eb   :  { %v775_v2 = vsel %vm310_vm12, %v767_v11, 0  ;;  %v998_v11 = vld [vmem:[#allocation9 + $0x48] sm:$0xff] }
 0x4ec   :  { %1431 = vmatpush3.bf16.xpose.msra.mxu1 %v775_v2  ;;  %v765_v12 = vpop.permute.xlu1 %764 }
 0x4ed   :  { %1432 = vmatprep.subr.bf16.mxu1 %v1674_v23  ;;  %v772_v16 = vsel %vm310_vm12, %v765_v12, 0 }
 0x4ee   :  { %v831_v13 = vpop.permute.xlu0 %830 }
 0x4ef   :  { %v839_v14 = vsel %vm310_vm12, %v831_v13, 0  ;;  %v997_v13 = vld [vmem:[#allocation9 + $0x40] sm:$0xff] }
 0x4f0   :  { %v895_v15 = vpop.permute.xlu1 %894  ;;  %1439 = vmatpush3.bf16.xpose.msra.mxu0 %v839_v14  ;;  %v996_v14 = vld [vmem:[#allocation9 + $0x38] sm:$0xff] }
 0x4f1   :  { %1440 = vmatprep.subr.bf16.mxu0 %v1674_v23  ;;  %v903_v20 = vsel %vm310_vm12, %v895_v15, 0  ;;  %v995_v15 = vld [vmem:[#allocation9 + $0x30] sm:$0xff] }
 0x4f2   :  { %v761_v19 = vpop.permute.xlu0 %760 }
 0x4f4   :  { %1433 = vmatpush3.bf16.xpose.msra.mxu1 %v772_v16  ;;  %v829_v17 = vpop.permute.xlu1 %828  ;;  %v994_v16 = vld [vmem:[#allocation9 + $0x28] sm:$0xff] }
 0x4f5   :  { %1446 = vmatprep.subr.bf16.mxu1 %v1674_v23  ;;  %v836_v18 = vsel %vm310_vm12, %v829_v17, 0 }
 0x4f6   :  { %v893_v22 = vpop.permute.xlu0 %892 }
 0x4f7   :  { %v900_v24 = vsel %vm310_vm12, %v893_v22, 0 }
 0x4f8   :  { %1441 = vmatpush3.bf16.xpose.msra.mxu0 %v836_v18  ;;  %v827_v21 = vpop.permute.xlu1 %826 }
 0x4f9   :  { %1454 = vmatprep.subr.mxu0 %v1004_v59 }
 0x4fa   :  { %v891_v25 = vpop.permute.xlu0 %890 }
 0x4fb   :  { %1435 = vmatmul.mubr.msk.bf16.vlgmr.msra.gmra.mxu1 %vm310_vm12, %v761_v19  ;;  %v993_v19 = vld [vmem:[#allocation9 + $0x20] sm:$0xff] }
 0x4fc   :  { %1447 = vmatpush3.bf16.xpose.msra.mxu1 %v903_v20  ;;  %1450 = vmatprep.mubr.msk.bf16.mxu1 %vm1677_vm3, %v1674_v23  ;;  %v992_v20 = vld [vmem:[#allocation9 + $0x18] sm:$0xff] }
 0x4fd   :  { %1448 = vmatprep.subr.bf16.mxu1 %v1674_v23 }
 0x4ff   :  { %1443 = vmatmul.mubr.msk.bf16.vlgmr.msra.gmra.mxu0 %vm310_vm12, %v827_v21 }
 0x500   :  { %1455 = vmatpush3.msra.mxu0 %v1004_v59 }
 0x501   :  { %1456 = vmatprep.subr.mxu0 %v1003_v60 }
 0x502   :  { %1457 = vmatpush3.msra.mxu0 %v1003_v60 }
 0x504   :  { %1449 = vmatpush3.bf16.xpose.msra.mxu1 %v900_v24  ;;  %v991_v24 = vld [vmem:[#allocation9 + $0x10] sm:$0xff] }
 0x505   :  { %1489 = vmatprep.subr.mxu1 %v1674_v23 }
 0x50b   :  { %1451 = vmatmul.mubr.msk.bf16.vlgmr.msra.gmra.mxu1 %vm310_vm12, %v891_v25  ;;  %v990_v25 = vld [vmem:[#allocation9 + $0x8] sm:$0xff] }
 0x50c   :  { %1493 = vmatprep.mubr.msk.f32.mxu1 %vm1677_vm3, %v1674_v23 }
 0x548   :  { %v743_v26 = vpop.f32.mrf.mxu0 }
 0x549   :  { %v1943_v50 = vadd.f32 %v743_v26, %v1804_v49  ;;  %v989_v26 = vld [vmem:[#allocation9] sm:$0xff] }
 0x54a   :  { %v1428_v27 = vpop.f32.mrf.mxu0 }
 0x54b   :  { %v750_v57 = vsel %vm310_vm12, %v1943_v50, -inf }
 0x54c   :  { %v746_v28 = vpop.f32.mrf.mxu0 }
 0x54d   :  { %v1950_v56 = vadd.f32 %v746_v28, %v1806_v53 }
 0x54e   :  { %v1429_v29 = vpop.f32.mrf.mxu0 }
 0x5bb   :  { %v811_v30 = vpop.f32.mrf.mxu1 }
 0x5bc   :  { %v812_v31 = vadd.f32 %v811_v30, %v1804_v49 }
 0x5bd   :  { %v1436_v32 = vpop.f32.mrf.mxu1 }
 0x5be   :  { %v818_v33 = vsel %vm310_vm12, %v812_v31, -inf }
 0x5bf   :  { %819 = vmax.xlane.f32.xlu1 %v818_v33  ;;  %v814_v34 = vpop.f32.mrf.mxu1  ;;  %v875_v35 = vpop.f32.mrf.mxu0 }
 0x5c0   :  { %v876_v36 = vadd.f32 %v875_v35, %v1804_v49  ;;  %v815_v39 = vadd.f32 %v814_v34, %v1806_v53 }
 0x5c1   :  { %v1437_v37 = vpop.f32.mrf.mxu1  ;;  %v1444_v38 = vpop.f32.mrf.mxu0 }
 0x5c2   :  { %v882_v40 = vsel %vm310_vm12, %v876_v36, -inf  ;;  %v821_v44 = vsel %vm753_vm11, %v815_v39, -inf }
 0x5c3   :  { %883 = vmax.xlane.f32.xlu0 %v882_v40  ;;  %v878_v41 = vpop.f32.mrf.mxu0 }
 0x5c4   :  { %v879_v42 = vadd.f32 %v878_v41, %v1806_v53 }
 0x5c5   :  { %v1445_v43 = vpop.f32.mrf.mxu0 }
 0x5c6   :  { %v885_v45 = vsel %vm753_vm11, %v879_v42, -inf }
 0x5c7   :  { %822 = vmax.xlane.f32.xlu0 %v821_v44  ;;  %886 = vmax.xlane.f32.xlu1 %v885_v45 }
 0x5cb   :  { %v939_v46 = vpop.f32.mrf.mxu1 }
 0x5cc   :  { %v940_v47 = vadd.f32 %v939_v46, %v1804_v49  ;;  %v754_v49 = vsel %vm753_vm11, %v1950_v56, -inf }
 0x5cd   :  { %v1452_v48 = vpop.f32.mrf.mxu1 }
 0x5ce   :  { %v946_v51 = vsel %vm310_vm12, %v940_v47, -inf }
 0x5cf   :  { %v942_v52 = vpop.f32.mrf.mxu1  ;;  %947 = vmax.xlane.f32.xlu0 %v946_v51 }
 0x5d0   :  { %v1947_v54 = vadd.f32 %v942_v52, %v1806_v53  ;;  %v1002_v53 = vld [vmem:[#allocation9 + $0x68] sm:$0xff] }
 0x5d1   :  { %v1453_v55 = vpop.f32.mrf.mxu1  ;;  %1458 = vmatprep.subr.mxu0 %v1002_v53 }
 0x5d2   :  { %v949_v58 = vsel %vm753_vm11, %v1947_v54, -inf  ;;  %1459 = vmatpush3.msra.mxu0 %v1002_v53 }
 0x5d3   :  { %751 = vmax.xlane.f32.xlu0 %v750_v57  ;;  %950 = vmax.xlane.f32.xlu1 %v949_v58 }
 0x5d4   :  { %1460 = vmatprep.subr.mxu0 %v1001_v1 }
 0x5d5   :  { %1461 = vmatpush3.msra.mxu0 %v1001_v1 }
 0x5d6   :  { %1462 = vmatprep.subr.mxu0 %v1000_v4 }
 0x5d7   :  { %755 = vmax.xlane.f32.xlu1 %v754_v49  ;;  %1463 = vmatpush3.msra.mxu0 %v1000_v4  ;;  %v1088_v49 = vld [vmem:[#allocation11] sm:$0xff] }
 0x5d8   :  { %1464 = vmatprep.subr.mxu0 %v999_v6 }
 0x5d9   :  { %1465 = vmatpush3.msra.mxu0 %v999_v6 }
 0x5da   :  { %1466 = vmatprep.subr.mxu0 %v998_v11 }
 0x5db   :  { %1467 = vmatpush3.msra.mxu0 %v998_v11 }
 0x5dc   :  { %1468 = vmatprep.subr.mxu0 %v997_v13 }
 0x5dd   :  { %1469 = vmatpush3.msra.mxu0 %v997_v13 }
 0x5de   :  { %1470 = vmatprep.subr.mxu0 %v996_v14 }
 0x5df   :  { %1471 = vmatpush3.msra.mxu0 %v996_v14 }
 0x5e0   :  { %1472 = vmatprep.subr.mxu0 %v995_v15 }
 0x5e1   :  { %1473 = vmatpush3.msra.mxu0 %v995_v15 }
 0x5e2   :  { %1474 = vmatprep.subr.mxu0 %v994_v16 }
 0x5e3   :  { %1475 = vmatpush3.msra.mxu0 %v994_v16 }
 0x5e4   :  { %1476 = vmatprep.subr.mxu0 %v993_v19 }
 0x5e5   :  { %1477 = vmatpush3.msra.mxu0 %v993_v19 }
 0x5e6   :  { %1478 = vmatprep.subr.mxu0 %v992_v20 }
 0x5e7   :  { %1479 = vmatpush3.msra.mxu0 %v992_v20 }
 0x5e8   :  { %1480 = vmatprep.subr.mxu0 %v991_v24 }
 0x5e9   :  { %1481 = vmatpush3.msra.mxu0 %v991_v24 }
 0x5ea   :  { %1482 = vmatprep.subr.mxu0 %v990_v25 }
 0x5eb   :  { %1483 = vmatpush3.msra.mxu0 %v990_v25 }
 0x5ec   :  { %1484 = vmatprep.subr.mxu0 %v989_v26 }
 0x5ed   :  { %1485 = vmatpush3.msra.mxu0 %v989_v26 }
 0x648   :  { %v820_v3 = vpop.xlane.xlu1 %819 }
 0x649   :  { %v824_v5 = vsub.f32 %v812_v31, %v820_v3 }
 0x64b   :  { %956 = vrot.lane.b32.xlu0 %v824_v5, %s1678_s4 }
 0x64c   :  { %v884_v7 = vpop.xlane.xlu0 %883 }
 0x64d   :  { %v888_v8 = vsub.f32 %v876_v36, %v884_v7 }
 0x64f   :  { %964 = vrot.lane.b32.xlu1 %v888_v8, %s1676_s25 }
 0x650   :  { %v823_v9 = vpop.xlane.xlu0 %822  ;;  %v887_v10 = vpop.xlane.xlu1 %886 }
 0x651   :  { %v825_v2 = vsub.f32 %v815_v39, %v823_v9  ;;  %v889_v12 = vsub.f32 %v879_v42, %v887_v10 }
 0x653   :  { %958 = vrot.lane.b32.xlu1 %v825_v2, %s1678_s4  ;;  %966 = vrot.lane.b32.xlu0 %v889_v12, %s1676_s25 }
 0x658   :  { %v948_v17 = vpop.xlane.xlu0 %947 }
 0x659   :  { %v952_v18 = vsub.f32 %v940_v47, %v948_v17 }
 0x65b   :  { %972 = vrot.lane.b32.xlu1 %v952_v18, %s1675_s3 }
 0x65c   :  { %v951_v21 = vpop.xlane.xlu1 %950  ;;  %v752_v29 = vpop.xlane.xlu0 %751 }
 0x65d   :  { %v953_v22 = vsub.f32 %v1947_v54, %v951_v21  ;;  %v757_v32 = vsub.f32 %v1943_v50, %v752_v29 }
 0x65f   :  { %974 = vrot.lane.b32.xlu0 %v953_v22, %s1675_s3 }
 0x660   :  { %v756_v27 = vpop.xlane.xlu1 %755 }
 0x661   :  { %v758_v33 = vsub.f32 %v1950_v56, %v756_v27 }
 0x6bd   :  { %v957_v30 = vpop.permute.xlu0 %956 }
 0x6be   :  { %v978_v34 = vsel %vm310_vm12, %v757_v32, %v957_v30 }
 0x6c1   :  { %v965_v28 = vpop.permute.xlu1 %964 }
 0x6c2   :  { %v980_v35 = vsel %vm154_vm13, %v978_v34, %v965_v28 }
 0x6c5   :  { %v959_v31 = vpop.permute.xlu1 %958  ;;  %v967_v36 = vpop.permute.xlu0 %966 }
 0x6c6   :  { %v979_v38 = vsel %vm310_vm12, %v758_v33, %v959_v31 }
 0x6c7   :  { %v981_v42 = vsel %vm154_vm13, %v979_v38, %v967_v36  ;;  %vm1089_vm13 = vcmask 80896  }
 0x6cd   :  { %v973_v37 = vpop.permute.xlu1 %972 }
 0x6ce   :  { %v983_v39 = vsel %vm982_vm14, %v980_v35, %v973_v37 }
 0x6cf   :  { %v985_v40 = vmul.f32 1.442695, %v983_v39 }
 0x6d1   :  { %1533 = vpow2.f32 %v985_v40  ;;  %v975_v41 = vpop.permute.xlu0 %974 }
 0x6d2   :  { %v984_v43 = vsel %vm982_vm14, %v981_v42, %v975_v41 }
 0x6d3   :  { %v987_v44 = vmul.f32 1.442695, %v984_v43 }
 0x6d5   :  { %1535 = vpow2.f32 %v987_v44 }
 0x6de   :  { %v1534_v45 = vpop.eup %1533 }
 0x6df   :  { %1486 = vmatprep.mubr.f32.mxu0 %v1534_v45 }
 0x6e2   :  { %v1536_v46 = vpop.eup %1535 }
 0x6e3   :  { %1487 = vmatmul.mubr.f32.vlgmr.msra.gmra.mxu0 %v1536_v46 }
 0x7a3   :  { %v1488_v47 = vpop.f32.mrf.mxu0 }
 0x7a4   :  { %1537 = vrcp.f32 %v1488_v47 }
 0x7a5   :  { %v1071_v48 = vpop.f32.mrf.mxu0 }
 0x7a6   :  { %1539 = vrcp.f32 %v1071_v48 }
 0x7b1   :  { %v1538_v50 = vpop.eup %1537 }
 0x7b2   :  { %v1083_v51 = vmul.f32 %v1538_v50, %v1536_v46 }
 0x7b3   :  { %v1540_v52 = vpop.eup %1539 }
 0x7b4   :  { %v1085_v54 = vmul.f32 %v1083_v51, %v1083_v51  ;;  %v1082_v55 = vmul.f32 %v1540_v52, %v1534_v45 }
 0x7b6   :  { %v1087_v56 = vmul.f32 %v1085_v54, %v1085_v54  ;;  %v1084_v57 = vmul.f32 %v1082_v55, %v1082_v55 }
 0x7b8   :  { %1490 = vmatpush3.msk.msra.mxu1 %vm1093_vm15, %v1087_v56  ;;  %v1086_v58 = vmul.f32 %v1084_v57, %v1084_v57 }
 0x7b9   :  { %1491 = vmatprep.subr.mxu1 %v1674_v23 }
 0x7ba   :  { %1492 = vmatpush3.msra.mxu1 %v1086_v58 }
 0x7bb   :  { %1494 = vmatmul.mubr.msk.f32.vlgmr.msra.gmra.mxu1 %vm1089_vm13, %v1088_v49  ;;  %1496 = vmatprep.subr.mxu1 %v1674_v23 }
 0x7bc   :  { %1497 = vmatpush3.msra.mxu1 %v1832_v63  ;;  %1504 = vmatprep.mubr.msk.f32.mxu1 %vm1677_vm3, %v1674_v23 }
 0x7bd   :  { %1498 = vmatprep.subr.mxu1 %v1674_v23 }
 0x7be   :  { %1499 = vmatpush3.msra.mxu1 %v1835_v0 }
 0x7bf   :  { %1500 = vmatprep.subr.mxu1 %v1674_v23 }
 0x7c0   :  { %1501 = vmatpush3.msra.mxu1 %v1828_v61 }
 0x7c1   :  { %1502 = vmatprep.subr.mxu1 %v1674_v23 }
 0x7c2   :  { %1503 = vmatpush3.msra.mxu1 %v1830_v62 }
 0x87b   :  { %v1163_v59 = vpop.f32.mrf.mxu1 }
 0x87c   :  { %1541 = vrsqrt.f32 %v1163_v59  ;;  %vm1169_vm0 = vcmp.eq.f32.partialorder %v1163_v59, inf  ;;  %v1172_v1 = vand.u32 2147483648, %v1163_v59  ;;  %vm1171_vm1 = vcmp.eq.f32.partialorder %v1163_v59, 0.0 }
 0x87d   :  { %v1495_v60 = vpop.f32.mrf.mxu1 }
 0x889   :  { %v1542_v53 = vpop.eup %1541 }
 0x88a   :  { %v1168_v63 = vmul.f32 %v1542_v53, %v1163_v59 }
 0x88c   :  { %v1170_v3 = vsel %vm1169_vm0, %v1163_v59, %v1168_v63 }
 0x88d   :  { %v1173_v4 = vsel %vm1171_vm1, %v1172_v1, %v1170_v3 }
 0x88e   :  { %1543 = vrsqrt.f32 %v1173_v4  ;;  %vm1176_vm2 = vcmp.eq.f32.partialorder %v1173_v4, inf  ;;  %v1179_v6 = vand.u32 2147483648, %v1173_v4  ;;  %vm1178_vm3 = vcmp.eq.f32.partialorder %v1173_v4, 0.0 }
 0x89b   :  { %v1544_v0 = vpop.eup %1543 }
 0x89c   :  { %v1175_v5 = vmul.f32 %v1544_v0, %v1173_v4 }
 0x89e   :  { %v1177_v61 = vsel %vm1176_vm2, %v1173_v4, %v1175_v5 }
 0x89f   :  { %v1180_v23 = vsel %vm1178_vm3, %v1179_v6, %v1177_v61 }
 0x8a0   :  { %1186 = vrot.lane.b32.xlu0 %v1180_v23, %s1676_s25  ;;  %1182 = vrot.lane.b32.xlu1 %v1180_v23, %s1675_s3 }
 0x8a4   :  { %1190 = vrot.lane.b32.xlu1 %v1180_v23, %s1678_s4 }
 0x912   :  { %v1183_v62 = vpop.permute.xlu1 %1182  ;;  %v1187_v8 = vpop.permute.xlu0 %1186 }
 0x913   :  { %v1185_v7 = vadd.f32 %v1183_v62, %v1180_v23 }
 0x915   :  { %v1189_v9 = vadd.f32 %v1187_v8, %v1185_v7 }
 0x916   :  { %v1191_v10 = vpop.permute.xlu1 %1190 }
 0x917   :  { %v1193_v11 = vadd.f32 %v1191_v10, %v1189_v9 }
 0x919   :  { %v1194_v2 = vmul.f32 0.25, %v1193_v11 }
 0x91b   :  { %1505 = vmatmul.mubr.msk.f32.vlgmr.msra.gmra.mxu1 %vm310_vm12, %v1194_v2 }
 0x9db   :  { %v1264_v12 = vpop.f32.mrf.mxu1 }
 0x9dc   :  { %1268 = vst [vmem:[%s2000_s11] sm:$0xff] %v1264_v12 }
 0x9dd   :  { %v1506_v13 = vpop.f32.mrf.mxu1 }
 0x9de   :  { %1273 = vsyncpa [#allocation3], 1 }
 0x9df   :  { %1274 = vsyncpa [#allocation7], 1 }
 0x9e0   :  { %1275 = vsyncpa [#allocation10], 1 }
 0x9e1   :  { %1276 = vsyncpa [#allocation4], 1 }

</bundles_post_ra>
